<compile_context>
chip_gen: v6e
topology: v6e:2x2x1
jax: 0.10.0
libtpu: 0.0.40
codegen_flags: <defaults>
</compile_context>

<pallas_src>
import functools

import jax
import jax.numpy as jnp
import numpy as np
from jax.experimental import pallas as pl
from jax.experimental.pallas import tpu as pltpu

EPS = 1e-5
KS = 9                       # temporal kernel size
PAD = (KS - 1) // 2          # = 4


# ------------------------------ Pallas kernel ------------------------------ #

def _tcn_kernel(x_ref, w_ref, shift_ref, o_ref, rhs_ref, *, v, c_in):
    # x_ref:     (1, C_in, (T + 2*PAD) * V)  bf16, zero-padded along T
    # w_ref:     (CO_TILE, KS*C_in)          bf16, BN-scale-folded weights
    # shift_ref: (CO_TILE, 1)                f32, folded bias + BN shift
    # o_ref:     (1, CO_TILE, T*V)           bf16
    # rhs_ref:   (KS*C_in, T*V)              bf16 VMEM scratch: stacked taps
    tv = o_ref.shape[-1]

    # Build the stacked-K RHS once per sample (first C_out tile only); the
    # scratch persists across the inner "arbitrary" C_out grid axis.
    @pl.when(pl.program_id(1) == 0)
    def _build_stacked_rhs():
        x = x_ref[0]                                        # (C_in, (T+8)*V)
        for dt in range(KS):
            # Stores start at lane 0 (aligned). The shifted-window load's
            # realignment is absorbed by this single build pass.
            rhs_ref[dt * c_in:(dt + 1) * c_in, :] = x[:, dt * v: dt * v + tv]

    # ONE MXU matmul with K = KS*C_in (BN scale already folded into weights).
    acc = jnp.dot(w_ref[...], rhs_ref[...],
                  preferred_element_type=jnp.float32)        # (CO_TILE, T*V) f32

    # f32 epilogue: add folded bias/BN shift, cast to bf16 on the lane-dense store.
    o_ref[0] = (acc + shift_ref[...]).astype(o_ref.dtype)


# --------------------------------- wrapper --------------------------------- #

@jax.jit
def unit_tcn_forward(x, p):
    N, C_in, T, V = x.shape
    C_out = p['W'].shape[0]
    TV = T * V
    TPV = (T + 2 * PAD) * V
    f32 = jnp.float32
    bf16 = jnp.bfloat16

    # Fold conv bias + BN running stats:
    #   y = conv(x; W) * scale + (beta + (b - mean) * scale),
    #   scale = gamma / sqrt(var + eps); scale is folded into the weights.
    scale = (p['gamma'] / jnp.sqrt(p['var'] + EPS)).astype(f32)        # (C_out,)
    shift_col = (p['beta'] + (p['b'] - p['mean']) * scale
                 ).astype(f32).reshape(C_out, 1)

    # Tap-stacked, BN-scale-folded weights: W2[o, dt*C_in + c] = W[o,c,dt]*scale[o]
    w2 = (jnp.transpose(p['W'], (0, 2, 1)).reshape(C_out, KS * C_in)
          * scale[:, None]).astype(bf16)

    # bf16 BEFORE padding (halves the pad round trip); flatten (T+8, V) into a
    # single lane-dense axis.
    xp = jnp.pad(x.astype(bf16), ((0, 0), (0, 0), (PAD, PAD), (0, 0)))
    x2 = xp.reshape(N, C_in, TPV)

    co_tile = C_out if C_out <= 128 else 128
    assert C_out % co_tile == 0

    out2d = pl.pallas_call(
        functools.partial(_tcn_kernel, v=V, c_in=C_in),
        out_shape=jax.ShapeDtypeStruct((N, C_out, TV), bf16),
        grid_spec=pltpu.PrefetchScalarGridSpec(
            num_scalar_prefetch=0,
            grid=(N, C_out // co_tile),
            in_specs=[
                pl.BlockSpec((1, C_in, TPV), lambda n, co: (n, 0, 0)),
                pl.BlockSpec((co_tile, KS * C_in), lambda n, co: (co, 0)),
                pl.BlockSpec((co_tile, 1), lambda n, co: (co, 0)),
            ],
            out_specs=pl.BlockSpec((1, co_tile, TV), lambda n, co: (n, co, 0)),
            scratch_shapes=[pltpu.VMEM((KS * C_in, TV), bf16)],
        ),
        compiler_params=pltpu.CompilerParams(
            dimension_semantics=("parallel", "arbitrary"),
            vmem_limit_bytes=64 * 1024 * 1024),
    )(x2, w2, shift_col)

    return out2d.reshape(N, C_out, T, V)


# ------------------------- deterministic parameters ------------------------ #

def init_params(key, C_in, C_out):
    ks = jax.random.split(key, 6)
    nrm = lambda k, shape, s: s * jax.random.normal(k, shape, jnp.float32)
    p = {}
    p['W'] = nrm(ks[0], (C_out, C_in, KS), 0.2)     # Conv2d weight (ks x 1)
    p['b'] = nrm(ks[1], (C_out,), 0.1)              # Conv2d bias
    p['gamma'] = 1.0 + 0.1 * jax.random.normal(ks[2], (C_out,))
    p['beta'] = 0.1 * jax.random.normal(ks[3], (C_out,))
    p['mean'] = 0.1 * jax.random.normal(ks[4], (C_out,))
    p['var'] = 0.5 + jnp.abs(jax.random.normal(ks[5], (C_out,)))
    return p


# ------------------------------ pure-JAX ref -------------------------------- #

def reference_forward(x, p):
    N, C_in, T, V = x.shape
    xp = jnp.pad(x, ((0, 0), (0, 0), (PAD, PAD), (0, 0)))
    conv = sum(jnp.einsum('oc,nctv->notv', p['W'][:, :, dt],
                          xp[:, :, dt:dt + T, :]) for dt in range(KS))
    sh = lambda a: a[None, :, None, None]
    conv = conv + sh(p['b'])
    y = (conv - sh(p['mean'])) / jnp.sqrt(sh(p['var']) + EPS)
    return y * sh(p['gamma']) + sh(p['beta'])               # dropout(0) = id


# ---------------------------------- main ------------------------------------ #

if __name__ == "__main__":
    N, C_in, C_out, T, V = 2, 4, 8, 16, 16
    key = jax.random.PRNGKey(0)
    kx, kp = jax.random.split(key)
    x = jax.random.normal(kx, (N, C_in, T, V), jnp.float32)
    params = init_params(kp, C_in, C_out)

    out = jax.block_until_ready(unit_tcn_forward(x, params))

    ref = reference_forward(x, params)
    np.testing.assert_allclose(np.asarray(out.astype(jnp.float32)),
                               np.asarray(ref), rtol=3e-2, atol=3e-2)
    print("KERNEL_OK")
</pallas_src>

<mosaic_0001>
module attributes {stable_mosaic.version = 11 : i64} {
  func.func @_tcn_kernel(%arg0: i32, %arg1: i32, %arg2: memref<1x4x384xbf16, #tpu.memory_space<vmem>>, %arg3: memref<8x36xbf16, #tpu.memory_space<vmem>>, %arg4: memref<8x1xf32, #tpu.memory_space<vmem>>, %arg5: memref<1x8x256xbf16, #tpu.memory_space<vmem>>, %arg6: memref<36x256xbf16, #tpu.memory_space<vmem>>) attributes {dimension_semantics = [#tpu.dimension_semantics<parallel>, #tpu.dimension_semantics<arbitrary>], iteration_bounds = array<i64: 2, 1>, scalar_prefetch = 0 : i64, scratch_operands = 1 : i64, tpu.core_type = #tpu.core_type<tc>, window_params = [{transform_indices = @transform_0, window_bounds = array<i64: 1, 4, 384>}, {transform_indices = @transform_1, window_bounds = array<i64: 8, 36>}, {transform_indices = @transform_2, window_bounds = array<i64: 8, 1>}, {transform_indices = @transform_3, window_bounds = array<i64: 1, 8, 256>}]} {
    %c0_i32 = arith.constant 0 : i32
    %0 = arith.cmpi eq, %arg1, %c0_i32 : i32
    %1 = arith.extui %0 : i1 to i32
    %c0_i32_0 = arith.constant 0 : i32
    %2 = arith.cmpi ne, %1, %c0_i32_0 : i32
    scf.if %2 {
      %c0_9 = arith.constant 0 : index
      %c0_10 = arith.constant 0 : index
      %c0_11 = arith.constant 0 : index
      %13 = vector.load %arg2[%c0_9, %c0_10, %c0_11] : memref<1x4x384xbf16, #tpu.memory_space<vmem>>, vector<1x4x384xbf16>
      %14 = vector.shape_cast %13 : vector<1x4x384xbf16> to vector<4x384xbf16>
      %15 = vector.extract_strided_slice %14 {offsets = [0, 0], sizes = [4, 256], strides = [1, 1]} : vector<4x384xbf16> to vector<4x256xbf16>
      %c0_12 = arith.constant 0 : index
      %c0_13 = arith.constant 0 : index
      %16 = vector.load %arg6[%c0_12, %c0_13] : memref<36x256xbf16, #tpu.memory_space<vmem>>, vector<4x256xbf16>
      tpu.vector_store %arg6[%c0_12, %c0_13], %15 {strides = array<i32>} : memref<36x256xbf16, #tpu.memory_space<vmem>>, vector<4x256xbf16>,
      %17 = vector.extract_strided_slice %14 {offsets = [0, 16], sizes = [4, 256], strides = [1, 1]} : vector<4x384xbf16> to vector<4x256xbf16>
      %c4 = arith.constant 4 : index
      %c0_14 = arith.constant 0 : index
      %18 = vector.load %arg6[%c4, %c0_14] : memref<36x256xbf16, #tpu.memory_space<vmem>>, vector<4x256xbf16>
      tpu.vector_store %arg6[%c4, %c0_14], %17 {strides = array<i32>} : memref<36x256xbf16, #tpu.memory_space<vmem>>, vector<4x256xbf16>,
      %19 = vector.extract_strided_slice %14 {offsets = [0, 32], sizes = [4, 256], strides = [1, 1]} : vector<4x384xbf16> to vector<4x256xbf16>
      %c8 = arith.constant 8 : index
      %c0_15 = arith.constant 0 : index
      %20 = vector.load %arg6[%c8, %c0_15] : memref<36x256xbf16, #tpu.memory_space<vmem>>, vector<4x256xbf16>
      tpu.vector_store %arg6[%c8, %c0_15], %19 {strides = array<i32>} : memref<36x256xbf16, #tpu.memory_space<vmem>>, vector<4x256xbf16>,
      %21 = vector.extract_strided_slice %14 {offsets = [0, 48], sizes = [4, 256], strides = [1, 1]} : vector<4x384xbf16> to vector<4x256xbf16>
      %c12 = arith.constant 12 : index
      %c0_16 = arith.constant 0 : index
      %22 = vector.load %arg6[%c12, %c0_16] : memref<36x256xbf16, #tpu.memory_space<vmem>>, vector<4x256xbf16>
      tpu.vector_store %arg6[%c12, %c0_16], %21 {strides = array<i32>} : memref<36x256xbf16, #tpu.memory_space<vmem>>, vector<4x256xbf16>,
      %23 = vector.extract_strided_slice %14 {offsets = [0, 64], sizes = [4, 256], strides = [1, 1]} : vector<4x384xbf16> to vector<4x256xbf16>
      %c16 = arith.constant 16 : index
      %c0_17 = arith.constant 0 : index
      %24 = vector.load %arg6[%c16, %c0_17] : memref<36x256xbf16, #tpu.memory_space<vmem>>, vector<4x256xbf16>
      tpu.vector_store %arg6[%c16, %c0_17], %23 {strides = array<i32>} : memref<36x256xbf16, #tpu.memory_space<vmem>>, vector<4x256xbf16>,
      %25 = vector.extract_strided_slice %14 {offsets = [0, 80], sizes = [4, 256], strides = [1, 1]} : vector<4x384xbf16> to vector<4x256xbf16>
      %c20 = arith.constant 20 : index
      %c0_18 = arith.constant 0 : index
      %26 = vector.load %arg6[%c20, %c0_18] : memref<36x256xbf16, #tpu.memory_space<vmem>>, vector<4x256xbf16>
      tpu.vector_store %arg6[%c20, %c0_18], %25 {strides = array<i32>} : memref<36x256xbf16, #tpu.memory_space<vmem>>, vector<4x256xbf16>,
      %27 = vector.extract_strided_slice %14 {offsets = [0, 96], sizes = [4, 256], strides = [1, 1]} : vector<4x384xbf16> to vector<4x256xbf16>
      %c24 = arith.constant 24 : index
      %c0_19 = arith.constant 0 : index
      %28 = vector.load %arg6[%c24, %c0_19] : memref<36x256xbf16, #tpu.memory_space<vmem>>, vector<4x256xbf16>
      tpu.vector_store %arg6[%c24, %c0_19], %27 {strides = array<i32>} : memref<36x256xbf16, #tpu.memory_space<vmem>>, vector<4x256xbf16>,
      %29 = vector.extract_strided_slice %14 {offsets = [0, 112], sizes = [4, 256], strides = [1, 1]} : vector<4x384xbf16> to vector<4x256xbf16>
      %c28 = arith.constant 28 : index
      %c0_20 = arith.constant 0 : index
      %30 = vector.load %arg6[%c28, %c0_20] : memref<36x256xbf16, #tpu.memory_space<vmem>>, vector<4x256xbf16>
      tpu.vector_store %arg6[%c28, %c0_20], %29 {strides = array<i32>} : memref<36x256xbf16, #tpu.memory_space<vmem>>, vector<4x256xbf16>,
      %31 = vector.extract_strided_slice %14 {offsets = [0, 128], sizes = [4, 256], strides = [1, 1]} : vector<4x384xbf16> to vector<4x256xbf16>
      %c32 = arith.constant 32 : index
      %c0_21 = arith.constant 0 : index
      %32 = vector.load %arg6[%c32, %c0_21] : memref<36x256xbf16, #tpu.memory_space<vmem>>, vector<4x256xbf16>
      tpu.vector_store %arg6[%c32, %c0_21], %31 {strides = array<i32>} : memref<36x256xbf16, #tpu.memory_space<vmem>>, vector<4x256xbf16>,
    } else {
    }
    %c0 = arith.constant 0 : index
    %c0_1 = arith.constant 0 : index
    %3 = vector.load %arg3[%c0, %c0_1] : memref<8x36xbf16, #tpu.memory_space<vmem>>, vector<8x36xbf16>
    %c0_2 = arith.constant 0 : index
    %c0_3 = arith.constant 0 : index
    %4 = vector.load %arg6[%c0_2, %c0_3] : memref<36x256xbf16, #tpu.memory_space<vmem>>, vector<36x256xbf16>
    %cst = arith.constant dense<0.000000e+00> : vector<8x256xf32>
    %5 = tpu.matmul %3, %4, %cst {dimension_numbers = #tpu.dot_dimension_numbers<[1], [0], [0], [1], [0, 0, 1, 1], [], []>} : vector<8x36xbf16>, vector<36x256xbf16>, vector<8x256xf32> -> vector<8x256xf32>
    %c0_4 = arith.constant 0 : index
    %c0_5 = arith.constant 0 : index
    %6 = vector.load %arg4[%c0_4, %c0_5] : memref<8x1xf32, #tpu.memory_space<vmem>>, vector<8x1xf32>
    %7 = vector.broadcast %6 : vector<8x1xf32> to vector<8x256xf32>
    %8 = arith.addf %5, %7 : vector<8x256xf32>
    %9 = arith.truncf %8 : vector<8x256xf32> to vector<8x256xbf16>
    %c0_6 = arith.constant 0 : index
    %c0_7 = arith.constant 0 : index
    %c0_8 = arith.constant 0 : index
    %10 = vector.load %arg5[%c0_6, %c0_7, %c0_8] : memref<1x8x256xbf16, #tpu.memory_space<vmem>>, vector<1x8x256xbf16>
    %11 = vector.shape_cast %10 : vector<1x8x256xbf16> to vector<8x256xbf16>
    %12 = vector.shape_cast %9 : vector<8x256xbf16> to vector<1x8x256xbf16>
    tpu.vector_store %arg5[%c0_6, %c0_7, %c0_8], %12 {strides = array<i32>} : memref<1x8x256xbf16, #tpu.memory_space<vmem>>, vector<1x8x256xbf16>,
    return
  }
  func.func @transform_0(%arg0: i32, %arg1: i32) -> (i32, i32, i32) {
    %c0_i32 = arith.constant 0 : i32
    %c0_i32_0 = arith.constant 0 : i32
    %c0_i32_1 = arith.constant 0 : i32
    return %arg0, %c0_i32, %c0_i32_0 : i32, i32, i32
  }
  func.func @transform_1(%arg0: i32, %arg1: i32) -> (i32, i32) {
    %c0_i32 = arith.constant 0 : i32
    %c0_i32_0 = arith.constant 0 : i32
    return %arg1, %c0_i32 : i32, i32
  }
  func.func @transform_2(%arg0: i32, %arg1: i32) -> (i32, i32) {
    %c0_i32 = arith.constant 0 : i32
    %c0_i32_0 = arith.constant 0 : i32
    return %arg1, %c0_i32 : i32, i32
  }
  func.func @transform_3(%arg0: i32, %arg1: i32) -> (i32, i32, i32) {
    %c0_i32 = arith.constant 0 : i32
    %c0_i32_0 = arith.constant 0 : i32
    return %arg0, %arg1, %c0_i32 : i32, i32, i32
  }
}

</mosaic_0001>

<bundles_post_ra>
// kernel: unit_tcn_forward.1
= control target key start
LH: loop header
LB: loop body
LE: loop exit
PB: predicated region body
PF: predicated region fallthrough
CT: control target
= control target key end

     0   :  { %s674_s12 = smov 0   ;;  %s676_s13 = smov 0   ;;  %s725_s0 = inlined_call_operand.vmem [shape: bf16[2,4,384], index: 0, kind: input, shape index: {}]   ;;  %s726_s1 = inlined_call_operand.vmem [shape: bf16[8,36], index: 1, kind: input, shape index: {}]   ;;  %s727_s2 = inlined_call_operand.vmem [shape: f32[8,1], index: 2, kind: input, shape index: {}]   ;;  %s728_s3 = inlined_call_operand.vmem [shape: bf16[2,8,256], index: 3, kind: output, shape index: {}]  }
   0x1   :  { %s678_s14 = smov 0  }
   0x2 LB: > { %s25_s15 = sadd.s32 1, %s639_s13  ;;  %p560_p0 = scmp.ge.s32.totalorder %s643_s14, 1  ;;  %s643_s14 = sphi %s678_s14, %s13_s14   ;;  %s639_s13 = sphi %s676_s13, %s730_s13   ;;  %s635_s12 = sphi %s674_s12, %s729_s12  }
   0x3   : > { %p27_p1 = scmp.ge.s32.totalorder %s25_s15, 2  ;;  %p169_p2 = scmp.lt.s32.totalorder %s643_s14, 3 }
   0x5   : > { %s732_s15 = smov (%p27_p1, %s25_s15), 0  ;;  %p170_p3 = pnand %p560_p0, %p169_p2 }
   0x6   : > { %p205_p4 = scmp.lt.s32.totalorder (!%p170_p3), %s635_s12, 1  ;;  %s646_s20 = smov (!%p170_p3), 48  }
   0x7   : > { %173 = sbr.rel (%p170_p3) target bundleno = 376 (0x178), region = 32  ;;  %s647_s21 = smov (!%p170_p3), 64  }
   0x8   : > { %s648_s22 = smov (!%p170_p3), 16   ;;  %s649_s23 = smov (!%p170_p3), 32  }
   0x9   : > { %s650_s24 = smov (!%p170_p3), 112   ;;  %s651_s25 = smov (!%p170_p3), 96  }
   0xa   : > { %s652_s26 = smov (!%p170_p3), 80  }
   0xc   : > { %v237_v0 = vlaneseq  ;;  %v645_v1 = vmov 1983009808   ;;  %s734_s12 = smov (!%p205_p4, %s635_s12), 1  ;;  %vm257_vm0 = vcmask 1043456   ;;  %vm383_vm1 = vcmask 1041408   ;;  %v348_v20 = vld [vmem:[%s727_s2] sm:$0xff] }
   0xd   : > { %v235_v2 = vunpack.c.l.s4 %v645_v1  ;;  %s578_s16 = smul.u32 6, %s734_s12  ;;  %v653_v19 = vmov 0   ;;  %vm311_vm2 = vcmask 392192   ;;  %vm300_vm3 = vcmask 523264   ;;  %s576_s4 = sshll.u32 %s734_s12, 3 }
   0xe   : > { %v238_v3 = vshrl.u32 %v237_v0, 7  ;;  %422 = vmatprep.mubr.bf16.mxu0 %v653_v19  ;;  %612 = vset.pattern.permute.xlu0 %v653_v19  ;;  %vm322_vm4 = vcmask 261120   ;;  %vm333_vm5 = vcmask 130048   ;;  %vm259_vm6 = vcmask 916480   ;;  %s226_s7 = scalar_lea.vmem %s728_s3, %s576_s4 }
   0xf   : > { %v236_v4 = vunpack.c.0.s8 %v235_v2  ;;  %s209_s19 = scalar_lea.vmem %s725_s0, %s578_s16  ;;  %vm278_vm7 = vcmask 785408   ;;  %vm289_vm8 = vcmask 654336   ;;  %vm379_vm9 = vcmask 293888  }
  0x10   : > { %v232_v6 = vld [vmem:[%s209_s19] sm:$0x3f] }
  0x11   : > { %v239_v5 = vsub.s32 %v236_v4, %v238_v3  ;;  %564 = vst.sshfl [vmem:[#allocation2] sm:$0xf pattern:$0x76325410] %v232_v6  ;;  %v263_v8 = vcombine.high %v232_v6, %v232_v6  ;;  %v243_v9 = vcombine.low %v232_v6, %v232_v6  ;;  %v342_v3 = vld [vmem:[%s726_s1] sm:$0xf] }
  0x13   : > { %v240_v7 = vrot.slane %v232_v6, %v239_v5  ;;  %v270_v10 = vrot.slane %v263_v8, %v239_v5  ;;  %v250_v13 = vrot.slane %v243_v9, %v239_v5 }
  0x15   : > { %306 = vrot.lane.b32.xlu1 %v240_v7, %s646_s20  ;;  %293 = vrot.lane.b32.xlu0 %v240_v7, %s647_s21  ;;  %v337_v11 = vrot.slane %v240_v7, 4  ;;  %v338_v12 = vrot.slane %v270_v10, 4 }
  0x17   : > { %v339_v14 = vsel %vm257_vm0, %v337_v11, %v338_v12 }
  0x18   : > { %341 = vst [vmem:[#allocation2 + $0x20] sm:$0x33] %v339_v14 }
  0x19   : > { %328 = vrot.lane.b32.xlu1 %v240_v7, %s648_s22  ;;  %315 = vrot.lane.b32.xlu0 %v240_v7, %s649_s23 }
  0x1d   : > { %304 = vrot.lane.b32.xlu1 %v250_v13, %s646_s20  ;;  %295 = vrot.lane.b32.xlu0 %v270_v10, %s647_s21 }
  0x1f   : > { %v347_v15 = vld [vmem:[#allocation2 + $0x20] sm:$0x33] }
  0x20   : > { %v570_v16 = vcombine.high %v347_v15, %v347_v15  ;;  %v569_v17 = vcombine.low %v347_v15, %v347_v15 }
  0x21   : > { %317 = vrot.lane.b32.xlu1 %v270_v10, %s649_s23  ;;  %326 = vrot.lane.b32.xlu0 %v250_v13, %s648_s22 }
  0x22   : > { %571 = vmatprep.subr.msk.bf16.mxu0 %vm383_vm1, %v570_v16  ;;  %v385_v18 = vsel %vm383_vm1, %v569_v17, 0 }
  0x23   : > { %401 = vmatpush1.bf16.msra.mxu0 %v385_v18 }
  0x25   : > { %253 = vrot.lane.b32.xlu1 %v240_v7, %s650_s24  ;;  %251 = vrot.lane.b32.xlu0 %v250_v13, %s650_s24 }
  0x29   : > { %273 = vrot.lane.b32.xlu1 %v270_v10, %s651_s25  ;;  %271 = vrot.lane.b32.xlu0 %v240_v7, %s651_s25 }
  0x2d   : > { %284 = vrot.lane.b32.xlu1 %v240_v7, %s652_s26  ;;  %282 = vrot.lane.b32.xlu0 %v250_v13, %s652_s26 }
  0x31   : > { %351 = vperm.xlu0 %612, %v348_v20  }
  0x87   : > { %v307_v21 = vpop.permute.xlu1 %306  ;;  %v294_v22 = vpop.permute.xlu0 %293 }
  0x88   : > { %v309_v27 = vrot.slane %v307_v21, 4  ;;  %v297_v28 = vrot.slane %v294_v22, 4 }
  0x8b   : > { %v329_v23 = vpop.permute.xlu1 %328  ;;  %v316_v24 = vpop.permute.xlu0 %315 }
  0x8c   : > { %v331_v37 = vrot.slane %v329_v23, 4  ;;  %v319_v38 = vrot.slane %v316_v24, 4 }
  0x8f   : > { %v305_v25 = vpop.permute.xlu1 %304  ;;  %v296_v26 = vpop.permute.xlu0 %295 }
  0x90   : > { %v308_v29 = vrot.slane %v305_v25, 4  ;;  %v298_v30 = vrot.slane %v296_v26, 4 }
  0x92   : > { %v310_v31 = vsel %vm257_vm0, %v308_v29, %v309_v27  ;;  %v299_v32 = vsel %vm257_vm0, %v297_v28, %v298_v30 }
  0x93   : > { %v312_v33 = vsel %vm311_vm2, %v305_v25, %v310_v31  ;;  %v301_v34 = vsel %vm300_vm3, %v294_v22, %v299_v32  ;;  %v318_v35 = vpop.permute.xlu1 %317  ;;  %v327_v36 = vpop.permute.xlu0 %326 }
  0x94   : > { %314 = vst [vmem:[#allocation2 + $0x10] sm:$0xcc] %v312_v33  ;;  %303 = vst [vmem:[#allocation2 + $0x10] sm:$0x33] %v301_v34  ;;  %v320_v39 = vrot.slane %v318_v35, 4  ;;  %v330_v40 = vrot.slane %v327_v36, 4 }
  0x96   : > { %v321_v41 = vsel %vm257_vm0, %v319_v38, %v320_v39  ;;  %v332_v42 = vsel %vm257_vm0, %v330_v40, %v331_v37 }
  0x97   : > { %v323_v43 = vsel %vm322_vm4, %v316_v24, %v321_v41  ;;  %v334_v44 = vsel %vm333_vm5, %v327_v36, %v332_v42  ;;  %v254_v45 = vpop.permute.xlu1 %253  ;;  %v252_v46 = vpop.permute.xlu0 %251 }
  0x98   : > { %325 = vst [vmem:[#allocation2 + $0x18] sm:$0x33] %v323_v43  ;;  %336 = vst [vmem:[#allocation2 + $0x18] sm:$0xcc] %v334_v44  ;;  %v256_v47 = vrot.slane %v254_v45, 4  ;;  %v255_v48 = vrot.slane %v252_v46, 4 }
  0x9a   : > { %v258_v49 = vsel %vm257_vm0, %v255_v48, %v256_v47 }
  0x9b   : > { %v260_v50 = vsel %vm259_vm6, %v252_v46, %v258_v49  ;;  %v274_v51 = vpop.permute.xlu1 %273  ;;  %v272_v52 = vpop.permute.xlu0 %271 }
  0x9c   : > { %262 = vst [vmem:[#allocation2] sm:$0xcc] %v260_v50  ;;  %v276_v53 = vrot.slane %v274_v51, 4  ;;  %v275_v54 = vrot.slane %v272_v52, 4 }
  0x9e   : > { %v277_v55 = vsel %vm257_vm0, %v275_v54, %v276_v53 }
  0x9f   : > { %v279_v56 = vsel %vm278_vm7, %v272_v52, %v277_v55  ;;  %v285_v57 = vpop.permute.xlu1 %284  ;;  %v283_v58 = vpop.permute.xlu0 %282  ;;  %v615_v59 = vld [vmem:[#allocation2 + $0x14] ss:$8 sps:$4 sm:$0xff]   ;;  %v617_v60 = vld [vmem:[#allocation2 + $0x10] ss:$8 sps:$4 sm:$0xff]  }
  0xa0   : > { %281 = vst [vmem:[#allocation2 + $0x8] sm:$0x33] %v279_v56  ;;  %v287_v61 = vrot.slane %v285_v57, 4  ;;  %v286_v62 = vrot.slane %v283_v58, 4  ;;  %402 = vmatprep.subr.bf16.mxu0 %v615_v59 }
  0xa1   : > { %403 = vmatpush1.bf16.msra.mxu0 %v617_v60 }
  0xa2   : > { %v288_v63 = vsel %vm257_vm0, %v286_v62, %v287_v61 }
  0xa3   : > { %v290_v0 = vsel %vm289_vm8, %v283_v58, %v288_v63 }
  0xa4   : > { %292 = vst [vmem:[#allocation2 + $0x8] sm:$0xcc] %v290_v0 }
  0xab   : > { %v618_v1 = vld [vmem:[#allocation2 + $0x4] ss:$8 sps:$4 sm:$0xff]   ;;  %v620_v2 = vld [vmem:[#allocation2] ss:$8 sps:$4 sm:$0xff]  }
  0xac   : > { %404 = vmatprep.subr.bf16.mxu0 %v618_v1  ;;  %v352_v4 = vpop.permute.xlu0 %351 }
  0xad   : > { %405 = vmatpush1.bf16.msra.mxu0 %v620_v2 }
  0xb0   : > { %572 = vmatmul.mubr.msk.bf16.vlgmr.msra.gmra.mxu0 %vm379_vm9, %v342_v3 }
 0x170   : > { %v424_v5 = vpop.f32.mrf.mxu0 }
 0x171   : > { %v425_v7 = vadd.f32 %v424_v5, %v352_v4 }
 0x172   : > { %v426_v6 = vpop.f32.mrf.mxu0 }
 0x173   : > { %v427_v8 = vadd.f32 %v426_v6, %v352_v4 }
 0x174   : > { %v428_v9 = vpop.f32.mrf.mxu0 }
 0x175   : > { %v577_v10 = vpack.c.bf16 %v427_v8, %v425_v7 }
 0x176   : > { %v429_v11 = vpop.f32.mrf.mxu0 }
 0x177   : > { %439 = vst [vmem:[%s226_s7] sm:$0xff] %v577_v10 }
 0x178 PF: > { %s13_s14 = sadd.s32 1, %s643_s14   ;;  %s729_s12 = smov %s639_s13 }
 0x179   : > { %p10_p5 = scmp.ge.s32.totalorder %s13_s14, 4   ;;  %s730_s13 = smov %s732_s15 }
 0x17b   :  { %12 = sbr.rel (!%p10_p5) target bundleno = 2 (0x2), region = 72 }

</bundles_post_ra>
